<compile_context>
chip_gen: v5e
topology: v5e:2x2
jax: 0.10.0
libtpu: 0.0.40
codegen_flags: <defaults>
</compile_context>

<pallas_src>
import math

import jax
import jax.numpy as jnp
from jax.experimental import pallas as pl
from jax.experimental.pallas import tpu as pltpu

BN_EPS = 1e-5


def gating_context_kernel(xb_ref, xt_ref, w_ref, gamma_ref, beta_ref, o_ref):
    j = pl.program_id(0)
    tn = o_ref.shape[1]  # static column-tile width (multiple of 128)

    # ---- MXU: gates[:, tile] = x_bf16 @ W[:, tile]  (bf16 in, f32 accum) ----
    gates = jnp.dot(xb_ref[...], w_ref[...],
                    preferred_element_type=jnp.float32)       # (B, tn) f32

    # ---- BatchNorm1d: training-mode batch stats, biased variance ------------
    mean = jnp.mean(gates, axis=0, keepdims=True)             # (1, tn)
    centered = gates - mean                                   # reused below
    var = jnp.mean(centered * centered, axis=0, keepdims=True)

    start = pl.multiple_of(j * tn, 128)
    gamma = gamma_ref[:, pl.ds(start, tn)]                    # resident row slice
    beta = beta_ref[:, pl.ds(start, tn)]
    scale = jax.lax.rsqrt(var + BN_EPS) * gamma               # (1, tn)
    bn = centered * scale + beta                              # (B, tn)

    # ---- sigmoid via tanh: one EUP push, exact, no overflow path ------------
    gate = 0.5 * jnp.tanh(0.5 * bn) + 0.5

    # ---- gating product with the streamed f32 column tile of x --------------
    o_ref[...] = (xt_ref[...] * gate).astype(o_ref.dtype)


def gating_context(x, gating_weights, bn_gamma, bn_beta, *, tile_n=256):
    """Fused (x @ W) -> BatchNorm1d(batch stats) -> sigmoid -> x * gates.

    x:              (B, D) float32
    gating_weights: (D, D) float32 (cast to bf16 for the MXU inside)
    bn_gamma/beta:  (1, D) float32
    """
    B, D = x.shape
    d_pad = 128 * pl.cdiv(D, 128)  # lane-dense feature dim
    pad = d_pad - D
    if pad:
        x_p = jnp.pad(x, ((0, 0), (0, pad)))
        w_p = jnp.pad(gating_weights, ((0, pad), (0, pad)))
        gamma_p = jnp.pad(bn_gamma, ((0, 0), (0, pad)), constant_values=1.0)
        beta_p = jnp.pad(bn_beta, ((0, 0), (0, pad)))
    else:
        x_p, w_p, gamma_p, beta_p = x, gating_weights, bn_gamma, bn_beta

    # Cast once in the wrapper (halves x/W DMA bytes for the MXU path and
    # removes the per-grid-step full-block cast the old kernel did).
    x_bf16 = x_p.astype(jnp.bfloat16)
    w_bf16 = w_p.astype(jnp.bfloat16)

    tn = min(tile_n, d_pad)
    tn = 128 * pl.cdiv(tn, 128)
    while d_pad % tn:
        tn += 128
    # With only 1-2 tiles the serial grid just adds per-step + buffering
    # overhead: collapse to a single step.
    if d_pad // tn <= 2:
        tn = d_pad
    grid = (d_pad // tn,)

    # Explicit VMEM budget (resident blocks single-buffered, streamed blocks
    # double-buffered) so we neither rely on the chip's default scoped limit
    # (16 MiB on v5e, 32 MiB on v6e/v7x) nor silently overshoot v7x's 64 MiB.
    vmem_bytes = (
        B * d_pad * 2            # resident bf16 x (Buffered(1))
        + 2 * d_pad * tn * 2     # W bf16 column tile (double-buffered)
        + 2 * d_pad * 4          # gamma + beta resident rows (Buffered(1))
        + 2 * B * tn * 4         # streamed f32 x tile (double-buffered)
        + 2 * B * tn * 4         # output f32 tile (double-buffered)
    )
    vmem_limit = int(min(max(2 * vmem_bytes, 32 * 1024 * 1024),
                         64 * 1024 * 1024))

    out = pl.pallas_call(
        gating_context_kernel,
        out_shape=jax.ShapeDtypeStruct((B, d_pad), x.dtype),
        grid_spec=pltpu.PrefetchScalarGridSpec(
            num_scalar_prefetch=0,
            grid=grid,
            in_specs=[
                # bf16 x: full block, constant index -> fetched once, resident,
                # single buffer (no double-buffer waste on a constant block).
                pl.BlockSpec((B, d_pad), lambda j: (0, 0),
                             pipeline_mode=pl.Buffered(1)),
                # f32 x column tile for the gating product (streams).
                pl.BlockSpec((B, tn), lambda j: (0, j)),
                # W column tile (streams).
                pl.BlockSpec((d_pad, tn), lambda j: (0, j)),
                # gamma / beta: resident full rows, sliced in-kernel.
                pl.BlockSpec((1, d_pad), lambda j: (0, 0),
                             pipeline_mode=pl.Buffered(1)),
                pl.BlockSpec((1, d_pad), lambda j: (0, 0),
                             pipeline_mode=pl.Buffered(1)),
            ],
            out_specs=pl.BlockSpec((B, tn), lambda j: (0, j)),
        ),
        compiler_params=pltpu.CompilerParams(
            # Column tiles are independent (BN stats are per-feature over the
            # full, untiled batch) -> safe to split across v7x's TensorCores.
            dimension_semantics=("parallel",),
            vmem_limit_bytes=vmem_limit,
        ),
    )(x_bf16, x_p, w_bf16, gamma_p, beta_p)

    return out[:, :D] if pad else out


if __name__ == "__main__":
    key = jax.random.PRNGKey(0)
    k_x, k_w = jax.random.split(key)

    B = 32
    DIM = 256  # lane-dense; typical PointNetVlad gating dim

    x = jax.random.normal(k_x, (B, DIM), dtype=jnp.float32)
    gating_weights = (jax.random.normal(k_w, (DIM, DIM), dtype=jnp.float32)
                      * (1.0 / math.sqrt(DIM)))
    bn_gamma = jnp.ones((1, DIM), dtype=jnp.float32)   # BatchNorm1d default weight
    bn_beta = jnp.zeros((1, DIM), dtype=jnp.float32)   # BatchNorm1d default bias

    out = jax.block_until_ready(gating_context(x, gating_weights, bn_gamma, bn_beta))

    # Reference 1: same numerics as the kernel (bf16 MXU operands, f32 elsewhere).
    gates = jnp.dot(x.astype(jnp.bfloat16), gating_weights.astype(jnp.bfloat16),
                    preferred_element_type=jnp.float32)
    mean = gates.mean(axis=0, keepdims=True)
    var = ((gates - mean) ** 2).mean(axis=0, keepdims=True)
    bn = (gates - mean) / jnp.sqrt(var + BN_EPS) * bn_gamma + bn_beta
    ref_matched = x * jax.nn.sigmoid(bn)
    assert jnp.allclose(out, ref_matched, atol=1e-3, rtol=1e-2), \
        "mismatch vs bf16-matched reference"

    # Reference 2: full-f32 PyTorch-style forward (looser tolerance: the kernel
    # feeds bf16 operands to the MXU per the perf guidance).
    gates32 = x @ gating_weights
    mean32 = gates32.mean(axis=0, keepdims=True)
    var32 = ((gates32 - mean32) ** 2).mean(axis=0, keepdims=True)
    bn32 = (gates32 - mean32) / jnp.sqrt(var32 + BN_EPS) * bn_gamma + bn_beta
    ref_f32 = x * jax.nn.sigmoid(bn32)
    assert jnp.allclose(out, ref_f32, atol=3e-2, rtol=3e-2), "mismatch vs f32 reference"

    print("KERNEL_OK")
</pallas_src>

<mosaic_0001>
module attributes {stable_mosaic.version = 11 : i64} {
  func.func @gating_context_kernel(%arg0: i32, %arg1: memref<32x256xbf16, #tpu.memory_space<vmem>>, %arg2: memref<32x256xf32, #tpu.memory_space<vmem>>, %arg3: memref<256x256xbf16, #tpu.memory_space<vmem>>, %arg4: memref<1x256xf32, #tpu.memory_space<vmem>>, %arg5: memref<1x256xf32, #tpu.memory_space<vmem>>, %arg6: memref<32x256xf32, #tpu.memory_space<vmem>>) attributes {dimension_semantics = [#tpu.dimension_semantics<parallel>], iteration_bounds = array<i64: 1>, scalar_prefetch = 0 : i64, scratch_operands = 0 : i64, tpu.core_type = #tpu.core_type<tc>, window_params = [{pipeline_mode = #tpu.pipeline_mode<synchronous>, transform_indices = @transform_0, window_bounds = array<i64: 32, 256>}, {transform_indices = @transform_1, window_bounds = array<i64: 32, 256>}, {transform_indices = @transform_2, window_bounds = array<i64: 256, 256>}, {pipeline_mode = #tpu.pipeline_mode<synchronous>, transform_indices = @transform_3, window_bounds = array<i64: 1, 256>}, {pipeline_mode = #tpu.pipeline_mode<synchronous>, transform_indices = @transform_4, window_bounds = array<i64: 1, 256>}, {transform_indices = @transform_5, window_bounds = array<i64: 32, 256>}]} {
    %c0 = arith.constant 0 : index
    %c0_0 = arith.constant 0 : index
    %0 = vector.load %arg1[%c0, %c0_0] : memref<32x256xbf16, #tpu.memory_space<vmem>>, vector<32x256xbf16>
    %c0_1 = arith.constant 0 : index
    %c0_2 = arith.constant 0 : index
    %1 = vector.load %arg3[%c0_1, %c0_2] : memref<256x256xbf16, #tpu.memory_space<vmem>>, vector<256x256xbf16>
    %cst = arith.constant dense<0.000000e+00> : vector<32x256xf32>
    %2 = tpu.matmul %0, %1, %cst {dimension_numbers = #tpu.dot_dimension_numbers<[1], [0], [0], [1], [0, 0, 1, 1], [], []>} : vector<32x256xbf16>, vector<256x256xbf16>, vector<32x256xf32> -> vector<32x256xf32>
    %cst_3 = arith.constant dense<0.000000e+00> : vector<256xf32>
    %3 = vector.multi_reduction <add>, %2, %cst_3 [0] : vector<32x256xf32> to vector<256xf32>
    %4 = vector.shape_cast %3 : vector<256xf32> to vector<1x256xf32>
    %cst_4 = arith.constant 3.200000e+01 : f32
    %5 = vector.broadcast %cst_4 : f32 to vector<1x256xf32>
    %6 = arith.divf %4, %5 : vector<1x256xf32>
    %7 = vector.broadcast %6 : vector<1x256xf32> to vector<32x256xf32>
    %8 = arith.subf %2, %7 : vector<32x256xf32>
    %9 = arith.mulf %8, %8 : vector<32x256xf32>
    %cst_5 = arith.constant dense<0.000000e+00> : vector<256xf32>
    %10 = vector.multi_reduction <add>, %9, %cst_5 [0] : vector<32x256xf32> to vector<256xf32>
    %11 = vector.shape_cast %10 : vector<256xf32> to vector<1x256xf32>
    %cst_6 = arith.constant 3.200000e+01 : f32
    %12 = vector.broadcast %cst_6 : f32 to vector<1x256xf32>
    %13 = arith.divf %11, %12 : vector<1x256xf32>
    %c256_i32 = arith.constant 256 : i32
    %14 = arith.muli %arg0, %c256_i32 : i32
    %15 = tpu.assume_multiple %14, 128 : i32
    %c0_7 = arith.constant 0 : index
    %16 = arith.index_cast %15 : i32 to index
    %17 = vector.load %arg4[%c0_7, %16] : memref<1x256xf32, #tpu.memory_space<vmem>>, vector<1x256xf32>
    %c0_8 = arith.constant 0 : index
    %18 = arith.index_cast %15 : i32 to index
    %19 = vector.load %arg5[%c0_8, %18] : memref<1x256xf32, #tpu.memory_space<vmem>>, vector<1x256xf32>
    %cst_9 = arith.constant 9.99999974E-6 : f32
    %20 = vector.broadcast %cst_9 : f32 to vector<1x256xf32>
    %21 = arith.addf %13, %20 : vector<1x256xf32>
    %22 = math.rsqrt %21 : vector<1x256xf32>
    %23 = arith.mulf %22, %17 : vector<1x256xf32>
    %24 = vector.broadcast %23 : vector<1x256xf32> to vector<32x256xf32>
    %25 = arith.mulf %8, %24 : vector<32x256xf32>
    %26 = vector.broadcast %19 : vector<1x256xf32> to vector<32x256xf32>
    %27 = arith.addf %25, %26 : vector<32x256xf32>
    %cst_10 = arith.constant 5.000000e-01 : f32
    %28 = vector.broadcast %cst_10 : f32 to vector<32x256xf32>
    %29 = arith.mulf %28, %27 : vector<32x256xf32>
    %30 = math.tanh %29 : vector<32x256xf32>
    %cst_11 = arith.constant 5.000000e-01 : f32
    %31 = vector.broadcast %cst_11 : f32 to vector<32x256xf32>
    %32 = arith.mulf %31, %30 : vector<32x256xf32>
    %cst_12 = arith.constant 5.000000e-01 : f32
    %33 = vector.broadcast %cst_12 : f32 to vector<32x256xf32>
    %34 = arith.addf %32, %33 : vector<32x256xf32>
    %c0_13 = arith.constant 0 : index
    %c0_14 = arith.constant 0 : index
    %35 = vector.load %arg2[%c0_13, %c0_14] : memref<32x256xf32, #tpu.memory_space<vmem>>, vector<32x256xf32>
    %36 = arith.mulf %35, %34 : vector<32x256xf32>
    %c0_15 = arith.constant 0 : index
    %c0_16 = arith.constant 0 : index
    %37 = vector.load %arg6[%c0_15, %c0_16] : memref<32x256xf32, #tpu.memory_space<vmem>>, vector<32x256xf32>
    tpu.vector_store %arg6[%c0_15, %c0_16], %36 {strides = array<i32>} : memref<32x256xf32, #tpu.memory_space<vmem>>, vector<32x256xf32>,
    return
  }
  func.func @transform_0(%arg0: i32) -> (i32, i32) {
    %c0_i32 = arith.constant 0 : i32
    %c0_i32_0 = arith.constant 0 : i32
    %c0_i32_1 = arith.constant 0 : i32
    return %c0_i32, %c0_i32_0 : i32, i32
  }
  func.func @transform_1(%arg0: i32) -> (i32, i32) {
    %c0_i32 = arith.constant 0 : i32
    %c0_i32_0 = arith.constant 0 : i32
    return %c0_i32, %arg0 : i32, i32
  }
  func.func @transform_2(%arg0: i32) -> (i32, i32) {
    %c0_i32 = arith.constant 0 : i32
    %c0_i32_0 = arith.constant 0 : i32
    return %c0_i32, %arg0 : i32, i32
  }
  func.func @transform_3(%arg0: i32) -> (i32, i32) {
    %c0_i32 = arith.constant 0 : i32
    %c0_i32_0 = arith.constant 0 : i32
    %c0_i32_1 = arith.constant 0 : i32
    return %c0_i32, %c0_i32_0 : i32, i32
  }
  func.func @transform_4(%arg0: i32) -> (i32, i32) {
    %c0_i32 = arith.constant 0 : i32
    %c0_i32_0 = arith.constant 0 : i32
    %c0_i32_1 = arith.constant 0 : i32
    return %c0_i32, %c0_i32_0 : i32, i32
  }
  func.func @transform_5(%arg0: i32) -> (i32, i32) {
    %c0_i32 = arith.constant 0 : i32
    %c0_i32_0 = arith.constant 0 : i32
    return %c0_i32, %arg0 : i32, i32
  }
}

</mosaic_0001>

<bundles_post_ra>
// kernel: tpu_custom_call.1
= control target key start
LH: loop header
LB: loop body
LE: loop exit
PB: predicated region body
PF: predicated region fallthrough
CT: control target
= control target key end

     0   :  { %10 = vsyncpa [#allocation3], 0  ;;  %s1019_s0 = inlined_call_operand.hbm [shape: bf16[32,256], index: 0, kind: input, shape index: {}]   ;;  %s1020_s1 = inlined_call_operand.hbm [shape: f32[32,256], index: 1, kind: input, shape index: {}]   ;;  %s1021_s2 = inlined_call_operand.hbm [shape: bf16[256,256], index: 2, kind: input, shape index: {}]   ;;  %s1022_s3 = inlined_call_operand.vmem [shape: f32[1,256], index: 3, kind: input, shape index: {}]   ;;  %s1023_s4 = inlined_call_operand.hbm [shape: f32[1,256], index: 4, kind: input, shape index: {}]   ;;  %s1024_s5 = inlined_call_operand.hbm [shape: f32[32,256], index: 5, kind: output, shape index: {}]  }
   0x1   :  { %11 = vsyncpa [#allocation6], 0 }
   0x2   :  { %12 = vsyncpa [#allocation9], 0  ;;  %s31_s20 = sshll.u32 %s1020_s1, 4  ;;  %s32_s20 = int_to_ptr.hbm [resolvable:$true] %s31_s20 }
   0x3   :  { %13 = vsyncpa [#allocation4], 0  ;;  %s915_s21 = smov [#allocation5]   ;;  %s18_s25 = sshll.u32 %s1019_s0, 4  ;;  %s19_s25 = int_to_ptr.hbm [resolvable:$true] %s18_s25 }
   0x4   :  { %s33_s22 = sshll.u32 %s915_s21, 4  ;;  %s916_s26 = smov 256   ;;  %s34_s22 = int_to_ptr.vmem [resolvable:$true] %s33_s22 }
   0x5   :  { %s917_s27 = smov 16   ;;  %s918_s28 = smov [#allocation2]  }
   0x6   :  { %39 = dma.hbm_to_vmem [thread:$0]  %s32_s20, 1024, %s34_s22, [#allocation6], %s916_s26, %s916_s26, %s917_s27  }
   0x7   :  { %s20_s29 = sshll.u32 %s918_s28, 4  ;;  %s919_s1 = smov 128   ;;  %s21_s29 = int_to_ptr.vmem [resolvable:$true] %s20_s29 }
   0x8   :  { %s920_s30 = smov 8   ;;  %s44_s8 = sshll.u32 %s1021_s2, 4  ;;  %s45_s8 = int_to_ptr.hbm [resolvable:$true] %s44_s8 }
   0x9   :  { %26 = dma.hbm_to_vmem [thread:$0]  %s19_s25, 512, %s21_s29, [#allocation3], %s919_s1, %s919_s1, %s920_s30  }
   0xa   :  { %s921_s9 = smov [#allocation7]   ;;  %s60_s12 = sshll.u32 %s1023_s4, 4  ;;  %s61_s12 = int_to_ptr.hbm [resolvable:$true] %s60_s12 }
   0xb   :  { %s46_s0 = sshll.u32 %s921_s9, 4  ;;  %s922_s13 = smov [#allocation8]   ;;  %s47_s0 = int_to_ptr.vmem [resolvable:$true] %s46_s0 }
   0xc   :  { %52 = dma.hbm_to_vmem [thread:$0]  %s45_s8, 4096, %s47_s0, [#allocation6], %s919_s1, %s919_s1, %s920_s30  }
   0xd   :  { %s62_s14 = sshll.u32 %s922_s13, 4  ;;  %s63_s14 = int_to_ptr.vmem [resolvable:$true] %s62_s14 }
   0xe   :  { %65 = dma.hbm_to_vmem [thread:$0]  %s61_s12, 32, %s63_s14, [#allocation9]  }
   0xf   :  { %907 = dma.done.wait [#allocation3], 512  }
  0x10   :  { %908 = vsyncadd [#allocation3], 4294966784 }
  0x11   :  { %909 = dma.done.wait [#allocation6], 5120  }
  0x12   :  { %910 = vsyncadd [#allocation6], 4294962176 }
  0x13   :  { %911 = dma.done.wait [#allocation9], 32  }
  0x14   :  { %912 = vsyncadd [#allocation9], 4294967264  ;;  %v649_v0 = vld [vmem:[#allocation7 + $0x70] sm:$0xf]  ;;  %v738_v1 = vld [vmem:[#allocation7 + $0x74] sm:$0xf0] }
  0x15   :  { %v713_v2 = vld [vmem:[#allocation7 + $0xf0] sm:$0xf]  ;;  %v650_v3 = vor.u32 %v738_v1, %v649_v0  ;;  %v754_v4 = vld [vmem:[#allocation7 + $0xf4] sm:$0xf0]  ;;  %v737_v5 = vld [vmem:[#allocation7 + $0x74] sm:$0xf] }
  0x16   :  { %v651_v6 = vld [vmem:[#allocation7 + $0x78] sm:$0xf0]  ;;  %v714_v7 = vor.u32 %v754_v4, %v713_v2  ;;  %v753_v9 = vld [vmem:[#allocation7 + $0xf4] sm:$0xf]  ;;  %v641_v11 = vld [vmem:[#allocation7 + $0x60] sm:$0xf] }
  0x17   :  { %v654_v8 = vor.u32 %v737_v5, %v651_v6  ;;  %v715_v10 = vld [vmem:[#allocation7 + $0xf8] sm:$0xf0]  ;;  %298 = vmatpush.bf16.msra.mxu0 %v650_v3  ;;  %v736_v13 = vld [vmem:[#allocation7 + $0x64] sm:$0xf0]  ;;  %v705_v14 = vld [vmem:[#allocation7 + $0xe0] sm:$0xf] }
  0x18   :  { %v718_v12 = vor.u32 %v753_v9, %v715_v10  ;;  %v752_v15 = vld [vmem:[#allocation7 + $0xe4] sm:$0xf0]  ;;  %317 = vmatpush.bf16.msra.mxu1 %v714_v7  ;;  %v642_v16 = vor.u32 %v736_v13, %v641_v11  ;;  %v735_v18 = vld [vmem:[#allocation7 + $0x64] sm:$0xf]  ;;  %v643_v19 = vld [vmem:[#allocation7 + $0x68] sm:$0xf0] }
  0x19   :  { %336 = vmatpush.bf16.msra.mxu2 %v654_v8  ;;  %v706_v17 = vor.u32 %v752_v15, %v705_v14  ;;  %v751_v20 = vld [vmem:[#allocation7 + $0xe4] sm:$0xf]  ;;  %v646_v21 = vor.u32 %v735_v18, %v643_v19  ;;  %v707_v22 = vld [vmem:[#allocation7 + $0xe8] sm:$0xf0]  ;;  %v633_v23 = vld [vmem:[#allocation7 + $0x50] sm:$0xf] }
  0x1a   :  { %355 = vmatpush.bf16.msra.mxu3 %v718_v12  ;;  %v734_v24 = vld [vmem:[#allocation7 + $0x54] sm:$0xf0]  ;;  %v710_v25 = vor.u32 %v751_v20, %v707_v22  ;;  %v697_v26 = vld [vmem:[#allocation7 + $0xd0] sm:$0xf]  ;;  %v733_v28 = vld [vmem:[#allocation7 + $0x54] sm:$0xf] }
  0x1b   :  { %v750_v27 = vld [vmem:[#allocation7 + $0xd4] sm:$0xf0]  ;;  %299 = vmatpush.bf16.msra.mxu0 %v642_v16  ;;  %v634_v29 = vor.u32 %v734_v24, %v633_v23  ;;  %v635_v30 = vld [vmem:[#allocation7 + $0x58] sm:$0xf0]  ;;  %v749_v31 = vld [vmem:[#allocation7 + $0xd4] sm:$0xf] }
  0x1c   :  { %v699_v32 = vld [vmem:[#allocation7 + $0xd8] sm:$0xf0]  ;;  %318 = vmatpush.bf16.msra.mxu1 %v706_v17  ;;  %v698_v33 = vor.u32 %v750_v27, %v697_v26  ;;  %v638_v34 = vor.u32 %v733_v28, %v635_v30  ;;  %v625_v35 = vld [vmem:[#allocation7 + $0x40] sm:$0xf]  ;;  %v732_v36 = vld [vmem:[#allocation7 + $0x44] sm:$0xf0] }
  0x1d   :  { %337 = vmatpush.bf16.msra.mxu2 %v646_v21  ;;  %v689_v37 = vld [vmem:[#allocation7 + $0xc0] sm:$0xf]  ;;  %v702_v38 = vor.u32 %v749_v31, %v699_v32  ;;  %v748_v39 = vld [vmem:[#allocation7 + $0xc4] sm:$0xf0]  ;;  %v731_v40 = vld [vmem:[#allocation7 + $0x44] sm:$0xf]  ;;  %v626_v44 = vor.u32 %v732_v36, %v625_v35 }
  0x1e   :  { %356 = vmatpush.bf16.msra.mxu3 %v710_v25  ;;  %v627_v41 = vld [vmem:[#allocation7 + $0x48] sm:$0xf0]  ;;  %v747_v42 = vld [vmem:[#allocation7 + $0xc4] sm:$0xf]  ;;  %v690_v45 = vor.u32 %v748_v39, %v689_v37  ;;  %v617_v47 = vld [vmem:[#allocation7 + $0x30] sm:$0xf] }
  0x1f   :  { %v691_v43 = vld [vmem:[#allocation7 + $0xc8] sm:$0xf0]  ;;  %300 = vmatpush.bf16.msra.mxu0 %v634_v29  ;;  %v630_v46 = vor.u32 %v731_v40, %v627_v41  ;;  %v730_v48 = vld [vmem:[#allocation7 + $0x34] sm:$0xf0]  ;;  %v681_v49 = vld [vmem:[#allocation7 + $0xb0] sm:$0xf] }
  0x20   :  { %319 = vmatpush.bf16.msra.mxu1 %v698_v33  ;;  %v694_v50 = vor.u32 %v747_v42, %v691_v43  ;;  %v746_v51 = vld [vmem:[#allocation7 + $0xb4] sm:$0xf0]  ;;  %v729_v52 = vld [vmem:[#allocation7 + $0x34] sm:$0xf]  ;;  %v619_v53 = vld [vmem:[#allocation7 + $0x38] sm:$0xf0]  ;;  %v618_v56 = vor.u32 %v730_v48, %v617_v47 }
  0x21   :  { %338 = vmatpush.bf16.msra.mxu2 %v638_v34  ;;  %v745_v54 = vld [vmem:[#allocation7 + $0xb4] sm:$0xf]  ;;  %v683_v55 = vld [vmem:[#allocation7 + $0xb8] sm:$0xf0]  ;;  %v682_v57 = vor.u32 %v746_v51, %v681_v49  ;;  %v622_v58 = vor.u32 %v729_v52, %v619_v53  ;;  %v609_v59 = vld [vmem:[#allocation7 + $0x20] sm:$0xf] }
  0x22   :  { %357 = vmatpush.bf16.msra.mxu3 %v702_v38  ;;  %v728_v60 = vld [vmem:[#allocation7 + $0x24] sm:$0xf0]  ;;  %v673_v61 = vld [vmem:[#allocation7 + $0xa0] sm:$0xf]  ;;  %v686_v62 = vor.u32 %v745_v54, %v683_v55  ;;  %v727_v0 = vld [vmem:[#allocation7 + $0x24] sm:$0xf] }
  0x23   :  { %301 = vmatpush.bf16.msra.mxu0 %v626_v44  ;;  %v744_v63 = vld [vmem:[#allocation7 + $0xa4] sm:$0xf0]  ;;  %v611_v1 = vld [vmem:[#allocation7 + $0x28] sm:$0xf0]  ;;  %v743_v2 = vld [vmem:[#allocation7 + $0xa4] sm:$0xf]  ;;  %v610_v4 = vor.u32 %v728_v60, %v609_v59 }
  0x24   :  { %320 = vmatpush.bf16.msra.mxu1 %v690_v45  ;;  %v675_v3 = vld [vmem:[#allocation7 + $0xa8] sm:$0xf0]  ;;  %v674_v5 = vor.u32 %v744_v63, %v673_v61  ;;  %v614_v6 = vor.u32 %v727_v0, %v611_v1  ;;  %v601_v7 = vld [vmem:[#allocation7 + $0x10] sm:$0xf]  ;;  %v726_v8 = vld [vmem:[#allocation7 + $0x14] sm:$0xf0] }
  0x25   :  { %339 = vmatpush.bf16.msra.mxu2 %v630_v46  ;;  %v665_v9 = vld [vmem:[#allocation7 + $0x90] sm:$0xf]  ;;  %v678_v10 = vor.u32 %v743_v2, %v675_v3  ;;  %v742_v11 = vld [vmem:[#allocation7 + $0x94] sm:$0xf0]  ;;  %v725_v12 = vld [vmem:[#allocation7 + $0x14] sm:$0xf]  ;;  %v602_v16 = vor.u32 %v726_v8, %v601_v7 }
  0x26   :  { %358 = vmatpush.bf16.msra.mxu3 %v694_v50  ;;  %v603_v13 = vld [vmem:[#allocation7 + $0x18] sm:$0xf0]  ;;  %v741_v14 = vld [vmem:[#allocation7 + $0x94] sm:$0xf]  ;;  %v666_v17 = vor.u32 %v742_v11, %v665_v9  ;;  %v593_v19 = vld [vmem:[#allocation7] sm:$0xf] }
  0x27   :  { %302 = vmatpush.bf16.msra.mxu0 %v618_v56  ;;  %v667_v15 = vld [vmem:[#allocation7 + $0x98] sm:$0xf0]  ;;  %v606_v18 = vor.u32 %v725_v12, %v603_v13  ;;  %v724_v20 = vld [vmem:[#allocation7 + $0x4] sm:$0xf0]  ;;  %v657_v21 = vld [vmem:[#allocation7 + $0x80] sm:$0xf] }
  0x28   :  { %321 = vmatpush.bf16.msra.mxu1 %v682_v57  ;;  %v670_v22 = vor.u32 %v741_v14, %v667_v15  ;;  %v740_v23 = vld [vmem:[#allocation7 + $0x84] sm:$0xf0]  ;;  %v723_v24 = vld [vmem:[#allocation7 + $0x4] sm:$0xf]  ;;  %v595_v25 = vld [vmem:[#allocation7 + $0x8] sm:$0xf0]  ;;  %v594_v28 = vor.u32 %v724_v20, %v593_v19 }
  0x29   :  { %340 = vmatpush.bf16.msra.mxu2 %v622_v58  ;;  %v739_v26 = vld [vmem:[#allocation7 + $0x84] sm:$0xf]  ;;  %v659_v27 = vld [vmem:[#allocation7 + $0x88] sm:$0xf0]  ;;  %v577_v29 = vld [vmem:[#allocation2] sm:$0xf]  ;;  %v658_v31 = vor.u32 %v740_v23, %v657_v21  ;;  %v598_v32 = vor.u32 %v723_v24, %v595_v25 }
  0x2a   :  { %359 = vmatpush.bf16.msra.mxu3 %v686_v62  ;;  %v720_v30 = vld [vmem:[#allocation2 + $0x4] sm:$0xf0]  ;;  %v719_v33 = vld [vmem:[#allocation2 + $0x4] sm:$0xf]  ;;  %v579_v34 = vld [vmem:[#allocation2 + $0x8] sm:$0xf0]  ;;  %v662_v35 = vor.u32 %v739_v26, %v659_v27 }
  0x2b   :  { %303 = vmatpush.bf16.msra.mxu0 %v610_v4  ;;  %v578_v36 = vor.u32 %v720_v30, %v577_v29  ;;  %v582_v37 = vor.u32 %v719_v33, %v579_v34  ;;  %v585_v38 = vld [vmem:[#allocation2 + $0x10] sm:$0xf]  ;;  %v722_v39 = vld [vmem:[#allocation2 + $0x14] sm:$0xf0]  ;;  %v721_v40 = vld [vmem:[#allocation2 + $0x14] sm:$0xf] }
  0x2c   :  { %322 = vmatpush.bf16.msra.mxu1 %v674_v5  ;;  %v587_v41 = vld [vmem:[#allocation2 + $0x18] sm:$0xf0]  ;;  %v586_v42 = vor.u32 %v722_v39, %v585_v38  ;;  %v923_v50 = vmov 32.0   ;;  %s558_s18 = sshll.u32 %s1024_s5, 4  ;;  %s559_s18 = int_to_ptr.hbm [resolvable:$true] %s558_s18 }
  0x2d   :  { %341 = vmatpush.bf16.msra.mxu2 %v614_v6  ;;  %v590_v43 = vor.u32 %v721_v40, %v587_v41  ;;  %765 = vrcp.f32 %v923_v50 }
  0x2e   :  { %360 = vmatpush.bf16.msra.mxu3 %v678_v10 }
  0x2f   :  { %304 = vmatpush.bf16.msra.mxu0 %v602_v16 }
  0x30   :  { %323 = vmatpush.bf16.msra.mxu1 %v666_v17 }
  0x31   :  { %342 = vmatpush.bf16.msra.mxu2 %v606_v18 }
  0x32   :  { %361 = vmatpush.bf16.msra.mxu3 %v670_v22 }
  0x33   :  { %305 = vmatpush.bf16.msra.mxu0 %v594_v28  ;;  %v766_v55 = vpop.eup %765 }
  0x34   :  { %324 = vmatpush.bf16.msra.mxu1 %v658_v31  ;;  %v393_v60 = vmul.f32 32.0, %v766_v55  ;;  %vm397_vm0 = vweird.f32 %v766_v55 }
  0x35   :  { %343 = vmatpush.bf16.msra.mxu2 %v598_v32 }
  0x36   :  { %362 = vmatpush.bf16.msra.mxu3 %v662_v35  ;;  %306 = vmatmul.bf16.vlgmr.msra.gmra.mxu0 %v578_v36  ;;  %v394_v4 = vsub.f32 1.0, %v393_v60 }
  0x37   :  { %325 = vmatmul.bf16.vlgmr.msra.gmra.mxu1 %v582_v37 }
  0x38   :  { %344 = vmatmul.bf16.vlgmr.msra.gmra.mxu2 %v578_v36  ;;  %v395_v10 = vmul.f32 %v766_v55, %v394_v4 }
  0x39   :  { %363 = vmatmul.bf16.vlgmr.msra.gmra.mxu3 %v582_v37 }
  0x3a   :  { %v396_v17 = vadd.f32 %v766_v55, %v395_v10 }
  0x3c   :  { %v398_v22 = vsel %vm397_vm0, %v766_v55, %v396_v17 }
  0x46   :  { %311 = vmatmul.bf16.gmra.mxu0 %v586_v42 }
  0x47   :  { %330 = vmatmul.bf16.gmra.mxu1 %v590_v43 }
  0x48   :  { %349 = vmatmul.bf16.gmra.mxu2 %v586_v42 }
  0x49   :  { %368 = vmatmul.bf16.gmra.mxu3 %v590_v43 }
  0xb3   :  { %v307_v44 = vpop.f32.mrf.mxu0 }
  0xb4   :  { %v326_v45 = vpop.f32.mrf.mxu1 }
  0xb5   :  { %v327_v57 = vadd.f32 %v326_v45, %v307_v44 }
  0xbb   :  { %v345_v46 = vpop.f32.mrf.mxu2  ;;  %v309_v48 = vpop.f32.mrf.mxu0 }
  0xbc   :  { %v364_v47 = vpop.f32.mrf.mxu3  ;;  %v328_v49 = vpop.f32.mrf.mxu1 }
  0xbd   :  { %v329_v56 = vadd.f32 %v328_v49, %v309_v48  ;;  %v365_v6 = vadd.f32 %v364_v47, %v345_v46 }
  0xbf   :  { %v374_v61 = vadd.f32 %v329_v56, %v327_v57 }
  0xc3   :  { %v347_v51 = vpop.f32.mrf.mxu2  ;;  %v312_v53 = vpop.f32.mrf.mxu0 }
  0xc4   :  { %v366_v52 = vpop.f32.mrf.mxu3  ;;  %v331_v54 = vpop.f32.mrf.mxu1 }
  0xc5   :  { %v332_v58 = vadd.f32 %v331_v54, %v312_v53  ;;  %v367_v3 = vadd.f32 %v366_v52, %v347_v51 }
  0xc7   :  { %v375_v1 = vadd.f32 %v374_v61, %v332_v58  ;;  %v383_v9 = vadd.f32 %v367_v3, %v365_v6 }
  0xcb   :  { %v350_v59 = vpop.f32.mrf.mxu2  ;;  %v314_v63 = vpop.f32.mrf.mxu0 }
  0xcc   :  { %v369_v62 = vpop.f32.mrf.mxu3  ;;  %v333_v0 = vpop.f32.mrf.mxu1 }
  0xcd   :  { %v334_v2 = vadd.f32 %v333_v0, %v314_v63  ;;  %v370_v7 = vadd.f32 %v369_v62, %v350_v59 }
  0xcf   :  { %v376_v5 = vadd.f32 %v375_v1, %v334_v2  ;;  %v384_v14 = vadd.f32 %v383_v9, %v370_v7 }
  0xd1   :  { %v377_v8 = vrot.slane %v376_v5, 4 }
  0xd3   :  { %v352_v11 = vpop.f32.mrf.mxu2  ;;  %v378_v12 = vadd.f32 %v377_v8, %v376_v5  ;;  %v441_v8 = vld [vmem:[%s1022_s3] sm:$0x3]  ;;  %s924_s3 = smov [#allocation10]  }
  0xd4   :  { %v371_v13 = vpop.f32.mrf.mxu3  ;;  %s556_s15 = sshll.u32 %s924_s3, 4  ;;  %s557_s15 = int_to_ptr.vmem [resolvable:$true] %s556_s15 }
  0xd5   :  { %v372_v15 = vadd.f32 %v371_v13, %v352_v11  ;;  %v379_v16 = vrot.slane %v378_v12, 2 }
  0xd7   :  { %v385_v18 = vadd.f32 %v384_v14, %v372_v15  ;;  %v380_v19 = vadd.f32 %v379_v16, %v378_v12  ;;  %v467_v12 = vperm.slane %v441_v8, 0  ;;  %v443_v16 = vld [vmem:[#allocation8] sm:$0x3] }
  0xd9   :  { %v386_v20 = vrot.slane %v385_v18, 4  ;;  %v381_v21 = vrot.slane %v380_v19, 1 }
  0xdb   :  { %v387_v23 = vadd.f32 %v386_v20, %v385_v18  ;;  %v382_v24 = vadd.f32 %v381_v21, %v380_v19  ;;  %v484_v21 = vperm.slane %v443_v16, 0 }
  0xdd   :  { %v388_v25 = vrot.slane %v387_v23, 2  ;;  %v399_v26 = vmul.f32 %v398_v22, %v382_v24 }
  0xdf   :  { %v389_v27 = vadd.f32 %v388_v25, %v387_v23  ;;  %v970_v28 = vsub.f32 %v327_v57, %v399_v26  ;;  %v972_v29 = vsub.f32 %v329_v56, %v399_v26  ;;  %v974_v30 = vsub.f32 %v332_v58, %v399_v26 }
  0xe0   :  { %v976_v32 = vsub.f32 %v334_v2, %v399_v26 }
  0xe1   :  { %v390_v31 = vrot.slane %v389_v27, 1  ;;  %v409_v33 = vmul.f32 %v970_v28, %v970_v28  ;;  %v411_v34 = vmul.f32 %v972_v29, %v972_v29  ;;  %v413_v36 = vmul.f32 %v974_v30, %v974_v30 }
  0xe2   :  { %v415_v39 = vmul.f32 %v976_v32, %v976_v32 }
  0xe3   :  { %v391_v35 = vadd.f32 %v390_v31, %v389_v27  ;;  %v417_v37 = vadd.f32 %v411_v34, %v409_v33  ;;  %v468_v31 = vperm.slane %v441_v8, 1 }
  0xe5   :  { %v400_v38 = vmul.f32 %v398_v22, %v391_v35  ;;  %v418_v40 = vadd.f32 %v417_v37, %v413_v36 }
  0xe7   :  { %v986_v41 = vsub.f32 %v365_v6, %v400_v38  ;;  %v988_v42 = vsub.f32 %v367_v3, %v400_v38  ;;  %v990_v43 = vsub.f32 %v370_v7, %v400_v38  ;;  %v419_v44 = vadd.f32 %v418_v40, %v415_v39 }
  0xe8   :  { %v992_v45 = vsub.f32 %v372_v15, %v400_v38 }
  0xe9   :  { %v410_v46 = vmul.f32 %v986_v41, %v986_v41  ;;  %v412_v47 = vmul.f32 %v988_v42, %v988_v42  ;;  %v420_v48 = vrot.slane %v419_v44, 4  ;;  %v414_v49 = vmul.f32 %v990_v43, %v990_v43 }
  0xea   :  { %v416_v52 = vmul.f32 %v992_v45, %v992_v45 }
  0xeb   :  { %v426_v50 = vadd.f32 %v412_v47, %v410_v46  ;;  %v421_v51 = vadd.f32 %v420_v48, %v419_v44 }
  0xed   :  { %v427_v53 = vadd.f32 %v426_v50, %v414_v49  ;;  %v422_v54 = vrot.slane %v421_v51, 2 }
  0xef   :  { %v428_v55 = vadd.f32 %v427_v53, %v416_v52  ;;  %v423_v56 = vadd.f32 %v422_v54, %v421_v51 }
  0xf1   :  { %v429_v57 = vrot.slane %v428_v55, 4  ;;  %v424_v58 = vrot.slane %v423_v56, 1 }
  0xf3   :  { %v430_v59 = vadd.f32 %v429_v57, %v428_v55  ;;  %v425_v60 = vadd.f32 %v424_v58, %v423_v56 }
  0xf5   :  { %v431_v61 = vrot.slane %v430_v59, 2  ;;  %v435_v62 = vmul.f32 %v425_v60, %v398_v22 }
  0xf7   :  { %v432_v63 = vadd.f32 %v431_v61, %v430_v59  ;;  %v444_v0 = vadd.f32 1e-05, %v435_v62  ;;  %v528_v61 = vld [vmem:[#allocation5] sm:$0xff] }
  0xf9   :  { %v433_v1 = vrot.slane %v432_v63, 1  ;;  %767 = vrsqrt.f32 %v444_v0  ;;  %vm452_vm2 = vweird.f32 %v444_v0 }
  0xfb   :  { %v434_v2 = vadd.f32 %v433_v1, %v432_v63  ;;  %v532_v1 = vld [vmem:[#allocation5 + $0x20] sm:$0xff] }
  0xfd   :  { %v436_v3 = vmul.f32 %v434_v2, %v398_v22 }
  0xff   :  { %v445_v4 = vadd.f32 1e-05, %v436_v3  ;;  %v768_v5 = vpop.eup %767  ;;  %v534_v3 = vld [vmem:[#allocation5 + $0x30] sm:$0xff] }
 0x100   :  { %v447_v6 = vmul.f32 %v768_v5, %v444_v0  ;;  %vm453_vm1 = vweird.f32 %v768_v5 }
 0x101   :  { %769 = vrsqrt.f32 %v445_v4  ;;  %vm454_vm3 = vmor %vm452_vm2, %vm453_vm1  ;;  %vm462_vm5 = vweird.f32 %v445_v4 }
 0x102   :  { %v448_v7 = vmul.f32 %v768_v5, %v447_v6 }
 0x104   :  { %v449_v9 = vmul.f32 0.5, %v448_v7 }
 0x106   :  { %v450_v11 = vsub.f32 1.5, %v449_v9 }
 0x107   :  { %v770_v10 = vpop.eup %769 }
 0x108   :  { %v457_v13 = vmul.f32 %v770_v10, %v445_v4  ;;  %v451_v14 = vmul.f32 %v768_v5, %v450_v11  ;;  %vm463_vm4 = vweird.f32 %v770_v10 }
 0x109   :  { %vm464_vm6 = vmor %vm462_vm5, %vm463_vm4 }
 0x10a   :  { %v458_v15 = vmul.f32 %v770_v10, %v457_v13  ;;  %v455_v17 = vsel %vm454_vm3, %v768_v5, %v451_v14  ;;  %v529_v14 = vld [vmem:[#allocation5 + $0x8] sm:$0xff] }
 0x10b   :  { %v471_v18 = vmul.f32 %v467_v12, %v455_v17 }
 0x10c   :  { %v459_v19 = vmul.f32 0.5, %v458_v15 }
 0x10d   :  { %v473_v20 = vperm.slane %v471_v18, 0  ;;  %v531_v18 = vld [vmem:[#allocation5 + $0x18] sm:$0xff] }
 0x10e   :  { %v460_v22 = vsub.f32 1.5, %v459_v19 }
 0x10f   :  { %v475_v23 = vmul.f32 %v473_v20, %v970_v28  ;;  %v477_v24 = vmul.f32 %v473_v20, %v972_v29  ;;  %v479_v25 = vmul.f32 %v473_v20, %v974_v30  ;;  %v481_v26 = vmul.f32 %v473_v20, %v976_v32 }
 0x110   :  { %v461_v27 = vmul.f32 %v770_v10, %v460_v22  ;;  %v485_v30 = vperm.slane %v443_v16, 1 }
 0x111   :  { %v488_v33 = vadd.f32 %v484_v21, %v475_v23  ;;  %v490_v34 = vadd.f32 %v484_v21, %v477_v24  ;;  %v492_v35 = vadd.f32 %v484_v21, %v479_v25  ;;  %v494_v36 = vadd.f32 %v484_v21, %v481_v26  ;;  %v533_v21 = vld [vmem:[#allocation5 + $0x28] sm:$0xff]  ;;  %v535_v23 = vld [vmem:[#allocation5 + $0x38] sm:$0xff] }
 0x112   :  { %v465_v37 = vsel %vm464_vm6, %v770_v10, %v461_v27 }
 0x113   :  { %v496_v38 = vmul.f32 0.5, %v488_v33  ;;  %v498_v39 = vmul.f32 0.5, %v490_v34  ;;  %v500_v40 = vmul.f32 0.5, %v492_v35  ;;  %v502_v44 = vmul.f32 0.5, %v494_v36 }
 0x114   :  { %v472_v28 = vmul.f32 %v468_v31, %v465_v37 }
 0x115   :  { %771 = vtanh.f32 %v496_v38 }
 0x116   :  { %773 = vtanh.f32 %v498_v39  ;;  %v474_v29 = vperm.slane %v472_v28, 0 }
 0x117   :  { %775 = vtanh.f32 %v500_v40 }
 0x118   :  { %777 = vtanh.f32 %v502_v44  ;;  %v476_v32 = vmul.f32 %v474_v29, %v986_v41  ;;  %v478_v46 = vmul.f32 %v474_v29, %v988_v42  ;;  %v480_v47 = vmul.f32 %v474_v29, %v990_v43  ;;  %v530_v43 = vld [vmem:[#allocation5 + $0x10] sm:$0xff] }
 0x119   :  { %v482_v48 = vmul.f32 %v474_v29, %v992_v45 }
 0x11a   :  { %v489_v49 = vadd.f32 %v485_v30, %v476_v32  ;;  %v491_v50 = vadd.f32 %v485_v30, %v478_v46  ;;  %v493_v51 = vadd.f32 %v485_v30, %v480_v47 }
 0x11b   :  { %v772_v52 = vpop.eup %771  ;;  %v495_v53 = vadd.f32 %v485_v30, %v482_v48 }
 0x11c   :  { %v774_v54 = vpop.eup %773  ;;  %v512_v55 = vmul.f32 0.5, %v772_v52  ;;  %v497_v56 = vmul.f32 0.5, %v489_v49  ;;  %v499_v57 = vmul.f32 0.5, %v491_v50  ;;  %v501_v58 = vmul.f32 0.5, %v493_v51 }
 0x11d   :  { %v776_v59 = vpop.eup %775  ;;  %v514_v60 = vmul.f32 0.5, %v774_v54  ;;  %v503_v41 = vmul.f32 0.5, %v495_v53 }
 0x11e   :  { %v778_v62 = vpop.eup %777  ;;  %v516_v42 = vmul.f32 0.5, %v776_v59  ;;  %v520_v63 = vadd.f32 0.5, %v512_v55  ;;  %779 = vtanh.f32 %v497_v56 }
 0x11f   :  { %v518_v45 = vmul.f32 0.5, %v778_v62  ;;  %v522_v0 = vadd.f32 0.5, %v514_v60  ;;  %781 = vtanh.f32 %v499_v57 }
 0x120   :  { %v524_v2 = vadd.f32 0.5, %v516_v42  ;;  %v536_v4 = vmul.f32 %v528_v61, %v520_v63  ;;  %783 = vtanh.f32 %v501_v58 }
 0x121   :  { %v526_v5 = vadd.f32 0.5, %v518_v45  ;;  %v538_v6 = vmul.f32 %v530_v43, %v522_v0  ;;  %785 = vtanh.f32 %v503_v41 }
 0x122   :  { %v540_v7 = vmul.f32 %v532_v1, %v524_v2  ;;  %544 = vst [vmem:[#allocation10] sm:$0xff] %v536_v4 }
 0x123   :  { %v542_v8 = vmul.f32 %v534_v3, %v526_v5  ;;  %546 = vst [vmem:[#allocation10 + $0x10] sm:$0xff] %v538_v6 }
 0x124   :  { %v780_v9 = vpop.eup %779  ;;  %548 = vst [vmem:[#allocation10 + $0x20] sm:$0xff] %v540_v7 }
 0x125   :  { %v782_v10 = vpop.eup %781  ;;  %550 = vst [vmem:[#allocation10 + $0x30] sm:$0xff] %v542_v8  ;;  %v513_v11 = vmul.f32 0.5, %v780_v9 }
 0x126   :  { %v784_v12 = vpop.eup %783  ;;  %v515_v13 = vmul.f32 0.5, %v782_v10 }
 0x127   :  { %v786_v15 = vpop.eup %785  ;;  %v517_v16 = vmul.f32 0.5, %v784_v12  ;;  %v521_v17 = vadd.f32 0.5, %v513_v11 }
 0x128   :  { %v519_v19 = vmul.f32 0.5, %v786_v15  ;;  %v523_v20 = vadd.f32 0.5, %v515_v13 }
 0x129   :  { %v525_v22 = vadd.f32 0.5, %v517_v16  ;;  %v537_v24 = vmul.f32 %v529_v14, %v521_v17 }
 0x12a   :  { %v527_v25 = vadd.f32 0.5, %v519_v19  ;;  %v539_v26 = vmul.f32 %v531_v18, %v523_v20 }
 0x12b   :  { %v541_v27 = vmul.f32 %v533_v21, %v525_v22  ;;  %545 = vst [vmem:[#allocation10 + $0x8] sm:$0xff] %v537_v24 }
 0x12c   :  { %v543_v31 = vmul.f32 %v535_v23, %v527_v25  ;;  %547 = vst [vmem:[#allocation10 + $0x18] sm:$0xff] %v539_v26 }
 0x12d   :  { %549 = vst [vmem:[#allocation10 + $0x28] sm:$0xff] %v541_v27 }
 0x12e   :  { %551 = vst [vmem:[#allocation10 + $0x38] sm:$0xff] %v543_v31 }
 0x12f   :  { %564 = dma.vmem_to_hbm [thread:$0]  %s557_s15, 1024, %s559_s18, [#allocation4], %s916_s26, %s916_s26, %s917_s27  }
 0x130   :  { %913 = dma.done.wait [#allocation4], 1024  }
 0x131   :  { %914 = vsyncadd [#allocation4], 4294966272 }
 0x132   :  { %569 = vsyncpa [#allocation3], 1 }
 0x133   :  { %570 = vsyncpa [#allocation6], 1 }
 0x134   :  { %571 = vsyncpa [#allocation9], 1 }
 0x135   :  { %572 = vsyncpa [#allocation4], 1 }

</bundles_post_ra>
